<compile_context>
chip_gen: v6e
topology: v6e:2x2x1
jax: 0.10.0
libtpu: 0.0.40
codegen_flags: <defaults>
</compile_context>

<pallas_src>
import jax
import jax.numpy as jnp
from jax.experimental import pallas as pl
from jax.experimental.pallas import tpu as pltpu

N_PAD = 128  # lane-dense output width; real logits live in columns 0..1


def _round_up(x, m):
    return ((x + m - 1) // m) * m


def _head_kernel(x_ref, w1_ref, b1_ref, w2_ref, b2_ref, o_ref):
    # x_ref : [TILE_M, 2H]    bf16  (pairs of CLS vectors)
    # w1_ref: [2H, H]         bf16  (pre-transposed -> standard (K, N) layout)
    # b1_ref: [1, H]          f32
    # w2_ref: [H, N_PAD]      bf16  (pre-transposed, zero-padded from 2 -> N_PAD cols)
    # b2_ref: [1, N_PAD]      f32
    # o_ref : [TILE_M, N_PAD] bf16

    # dense: plain (M,K)x(K,N) MXU matmul, f32 accumulation.
    h = jnp.dot(x_ref[...], w1_ref[...], preferred_element_type=jnp.float32)
    h = jnp.tanh(h + b1_ref[...])  # bias + tanh in f32 (EUP)

    # TODO(synk): dropout is eval-mode identity here; training-mode dropout
    # would need pltpu.prng_seed / prng_random_bits masking.

    # out_proj: lane-dense [TILE_M, N_PAD] result (columns >= 2 hit zero weights).
    out = jnp.dot(h.astype(jnp.bfloat16), w2_ref[...],
                  preferred_element_type=jnp.float32)
    o_ref[...] = (out + b2_ref[...]).astype(o_ref.dtype)


def roberta_classification_head(features, w_dense, b_dense, w_out, b_out):
    """features: [B, S, H]; weights in PyTorch (out, in) layout."""
    B, S, H = features.shape
    assert B % 2 == 0, "batch must be even (reshape to [-1, 2H])"
    M = B // 2
    H2 = 2 * H

    # ---- glue (cheap relative to weight traffic) ----------------------------
    # CLS-token slice + pairing, fused with the bf16 cast.
    # TODO(synk): fuse the CLS gather + bf16 cast into the pallas_call operand
    # (allow_input_fusion or a (2*TILE_M, 1, H) feature BlockSpec) to avoid the
    # extra B*H HBM round trip for very large batches.
    x = features[:, 0, :].reshape(M, H2).astype(jnp.bfloat16)

    # One-time layout fix-ups (would normally happen at weight-load time):
    # standard (K, N) layouts so the kernel never transposes anything.
    w1 = jnp.transpose(w_dense).astype(jnp.bfloat16)          # [2H, H]
    b1 = b_dense.reshape(1, H).astype(jnp.float32)             # [1, H]
    w2 = jnp.zeros((H, N_PAD), jnp.bfloat16).at[:, :2].set(
        jnp.transpose(w_out).astype(jnp.bfloat16))             # [H, N_PAD]
    b2 = jnp.zeros((1, N_PAD), jnp.float32).at[0, :2].set(
        b_out.astype(jnp.float32))                             # [1, N_PAD]

    # ---- row tiling ----------------------------------------------------------
    # Fixed TILE_M with a cdiv grid (Pallas masks the partial last block).
    #  * cap at 512 rows: double-buffered x + single-buffered weights stay well
    #    under the 48 MiB scoped VMEM limit even at H=2048.
    #  * round_up(cdiv(M,2), 8): >=2 grid steps whenever M > 8, so both v7x
    #    TensorCores get work ("parallel" axis).
    TILE_M = min(512, max(8, _round_up(pl.cdiv(M, 2), 8)))
    grid = (pl.cdiv(M, TILE_M),)

    pinned = dict(pipeline_mode=pl.Buffered(1))  # loop-invariant: 1 buffer is enough

    cost = pl.CostEstimate(
        flops=2 * M * H2 * H + 2 * M * H * N_PAD,
        transcendentals=M * H,
        bytes_accessed=(x.size * 2 + w1.size * 2 + w2.size * 2
                        + b1.size * 4 + b2.size * 4 + M * N_PAD * 2),
    )

    out = pl.pallas_call(
        _head_kernel,
        out_shape=jax.ShapeDtypeStruct((M, N_PAD), jnp.bfloat16),
        grid=grid,
        in_specs=[
            pl.BlockSpec((TILE_M, H2), lambda i: (i, 0)),               # x rows, tiled
            pl.BlockSpec((H2, H), lambda i: (0, 0), **pinned),          # w1, pinned
            pl.BlockSpec((1, H), lambda i: (0, 0), **pinned),           # b1, pinned
            pl.BlockSpec((H, N_PAD), lambda i: (0, 0), **pinned),       # w2, pinned
            pl.BlockSpec((1, N_PAD), lambda i: (0, 0), **pinned),       # b2, pinned
        ],
        out_specs=pl.BlockSpec((TILE_M, N_PAD), lambda i: (i, 0)),
        compiler_params=pltpu.CompilerParams(
            dimension_semantics=("parallel",),      # shard row tiles across TCs (v7x)
            vmem_limit_bytes=48 * 1024 * 1024,      # > v5e 16 MiB default, < v7x 64 MiB
        ),
        cost_estimate=cost,
    )(x, w1, b1, w2, b2)

    # Slice the two real logit columns out of the lane-dense slab; f32 interface.
    return out[:, :2].astype(jnp.float32)


if __name__ == "__main__":
    # Small deterministic config: hidden=32, seq=8, batch=4 (-> 2 output rows).
    B, S, H = 4, 8, 32
    key = jax.random.PRNGKey(0)
    k_feat, k_w1, k_b1, k_w2, k_b2 = jax.random.split(key, 5)

    features = jax.random.normal(k_feat, (B, S, H), dtype=jnp.float32)
    w_dense = jax.random.normal(k_w1, (H, 2 * H), dtype=jnp.float32) * 0.02
    b_dense = jax.random.normal(k_b1, (H,), dtype=jnp.float32) * 0.02
    w_out = jax.random.normal(k_w2, (2, H), dtype=jnp.float32) * 0.02
    b_out = jax.random.normal(k_b2, (2,), dtype=jnp.float32) * 0.02

    out = roberta_classification_head(features, w_dense, b_dense, w_out, b_out)
    out = jax.block_until_ready(out)

    # f32 reference (eval-mode dropout = identity); bf16 memory path -> loose tol.
    x_ref = features[:, 0, :].reshape(-1, 2 * H)
    h_ref = jnp.tanh(x_ref @ w_dense.T + b_dense)
    ref = h_ref @ w_out.T + b_out

    assert out.shape == (B // 2, 2)
    assert jnp.allclose(out, ref, atol=1e-2, rtol=1e-2), float(
        jnp.max(jnp.abs(out - ref)))

    print("KERNEL_OK")
</pallas_src>

<mosaic_0001>
module attributes {stable_mosaic.version = 11 : i64} {
  func.func @_head_kernel(%arg0: i32, %arg1: memref<8x64xbf16, #tpu.memory_space<vmem>>, %arg2: memref<64x32xbf16, #tpu.memory_space<vmem>>, %arg3: memref<1x32xf32, #tpu.memory_space<vmem>>, %arg4: memref<32x128xbf16, #tpu.memory_space<vmem>>, %arg5: memref<1x128xf32, #tpu.memory_space<vmem>>, %arg6: memref<8x128xbf16, #tpu.memory_space<vmem>>) attributes {dimension_semantics = [#tpu.dimension_semantics<parallel>], iteration_bounds = array<i64: 1>, scalar_prefetch = 0 : i64, scratch_operands = 0 : i64, tpu.core_type = #tpu.core_type<tc>, window_params = [{transform_indices = @transform_0, window_bounds = array<i64: 8, 64>}, {pipeline_mode = #tpu.pipeline_mode<synchronous>, transform_indices = @transform_1, window_bounds = array<i64: 64, 32>}, {pipeline_mode = #tpu.pipeline_mode<synchronous>, transform_indices = @transform_2, window_bounds = array<i64: 1, 32>}, {pipeline_mode = #tpu.pipeline_mode<synchronous>, transform_indices = @transform_3, window_bounds = array<i64: 32, 128>}, {pipeline_mode = #tpu.pipeline_mode<synchronous>, transform_indices = @transform_4, window_bounds = array<i64: 1, 128>}, {transform_indices = @transform_5, window_bounds = array<i64: 8, 128>}]} {
    %c0 = arith.constant 0 : index
    %c0_0 = arith.constant 0 : index
    %0 = vector.load %arg1[%c0, %c0_0] : memref<8x64xbf16, #tpu.memory_space<vmem>>, vector<8x64xbf16>
    %c0_1 = arith.constant 0 : index
    %c0_2 = arith.constant 0 : index
    %1 = vector.load %arg2[%c0_1, %c0_2] : memref<64x32xbf16, #tpu.memory_space<vmem>>, vector<64x32xbf16>
    %cst = arith.constant dense<0.000000e+00> : vector<8x32xf32>
    %2 = tpu.matmul %0, %1, %cst {dimension_numbers = #tpu.dot_dimension_numbers<[1], [0], [0], [1], [0, 0, 1, 1], [], []>} : vector<8x64xbf16>, vector<64x32xbf16>, vector<8x32xf32> -> vector<8x32xf32>
    %c0_3 = arith.constant 0 : index
    %c0_4 = arith.constant 0 : index
    %3 = vector.load %arg3[%c0_3, %c0_4] : memref<1x32xf32, #tpu.memory_space<vmem>>, vector<1x32xf32>
    %4 = vector.broadcast %3 : vector<1x32xf32> to vector<8x32xf32>
    %5 = arith.addf %2, %4 : vector<8x32xf32>
    %6 = math.tanh %5 : vector<8x32xf32>
    %7 = arith.truncf %6 : vector<8x32xf32> to vector<8x32xbf16>
    %c0_5 = arith.constant 0 : index
    %c0_6 = arith.constant 0 : index
    %8 = vector.load %arg4[%c0_5, %c0_6] : memref<32x128xbf16, #tpu.memory_space<vmem>>, vector<32x128xbf16>
    %cst_7 = arith.constant dense<0.000000e+00> : vector<8x128xf32>
    %9 = tpu.matmul %7, %8, %cst_7 {dimension_numbers = #tpu.dot_dimension_numbers<[1], [0], [0], [1], [0, 0, 1, 1], [], []>} : vector<8x32xbf16>, vector<32x128xbf16>, vector<8x128xf32> -> vector<8x128xf32>
    %c0_8 = arith.constant 0 : index
    %c0_9 = arith.constant 0 : index
    %10 = vector.load %arg5[%c0_8, %c0_9] : memref<1x128xf32, #tpu.memory_space<vmem>>, vector<1x128xf32>
    %11 = vector.broadcast %10 : vector<1x128xf32> to vector<8x128xf32>
    %12 = arith.addf %9, %11 : vector<8x128xf32>
    %13 = arith.truncf %12 : vector<8x128xf32> to vector<8x128xbf16>
    %c0_10 = arith.constant 0 : index
    %c0_11 = arith.constant 0 : index
    %14 = vector.load %arg6[%c0_10, %c0_11] : memref<8x128xbf16, #tpu.memory_space<vmem>>, vector<8x128xbf16>
    tpu.vector_store %arg6[%c0_10, %c0_11], %13 {strides = array<i32>} : memref<8x128xbf16, #tpu.memory_space<vmem>>, vector<8x128xbf16>,
    return
  }
  func.func @transform_0(%arg0: i32) -> (i32, i32) {
    %c0_i32 = arith.constant 0 : i32
    %c0_i32_0 = arith.constant 0 : i32
    return %arg0, %c0_i32 : i32, i32
  }
  func.func @transform_1(%arg0: i32) -> (i32, i32) {
    %c0_i32 = arith.constant 0 : i32
    %c0_i32_0 = arith.constant 0 : i32
    %c0_i32_1 = arith.constant 0 : i32
    return %c0_i32, %c0_i32_0 : i32, i32
  }
  func.func @transform_2(%arg0: i32) -> (i32, i32) {
    %c0_i32 = arith.constant 0 : i32
    %c0_i32_0 = arith.constant 0 : i32
    %c0_i32_1 = arith.constant 0 : i32
    return %c0_i32, %c0_i32_0 : i32, i32
  }
  func.func @transform_3(%arg0: i32) -> (i32, i32) {
    %c0_i32 = arith.constant 0 : i32
    %c0_i32_0 = arith.constant 0 : i32
    %c0_i32_1 = arith.constant 0 : i32
    return %c0_i32, %c0_i32_0 : i32, i32
  }
  func.func @transform_4(%arg0: i32) -> (i32, i32) {
    %c0_i32 = arith.constant 0 : i32
    %c0_i32_0 = arith.constant 0 : i32
    %c0_i32_1 = arith.constant 0 : i32
    return %c0_i32, %c0_i32_0 : i32, i32
  }
  func.func @transform_5(%arg0: i32) -> (i32, i32) {
    %c0_i32 = arith.constant 0 : i32
    %c0_i32_0 = arith.constant 0 : i32
    return %arg0, %c0_i32 : i32, i32
  }
}

</mosaic_0001>

<bundles_post_ra>
// kernel: tpu_custom_call.1
= control target key start
LH: loop header
LB: loop body
LE: loop exit
PB: predicated region body
PF: predicated region fallthrough
CT: control target
= control target key end

     0   :  { %10 = vsyncpa [#allocation3], 0  ;;  %v332_v1 = vmov 0.0   ;;  %v50_v3 = vlaneseq  ;;  %vm333_vm0 = vmmov 0   ;;  %v334_v9 = vmov 1966171168   ;;  %s407_s0 = inlined_call_operand.vmem [shape: bf16[2,64], index: 0, kind: input, shape index: {}]   ;;  %s408_s1 = inlined_call_operand.vmem [shape: bf16[64,32], index: 1, kind: input, shape index: {}]   ;;  %s409_s2 = inlined_call_operand.vmem [shape: f32[1,32], index: 2, kind: input, shape index: {}]   ;;  %s410_s3 = inlined_call_operand.vmem [shape: bf16[32,128], index: 3, kind: input, shape index: {}]   ;;  %s411_s4 = inlined_call_operand.vmem [shape: f32[1,128], index: 4, kind: input, shape index: {}]   ;;  %s412_s5 = inlined_call_operand.hbm [shape: bf16[2,128], index: 5, kind: output, shape index: {}]  }
   0x1   :  { %v302_v0 = vld [vmem:[%s408_s1 + $0x18] sm:$0xff]   ;;  %276 = vmatprep.subr.bf16.mxu0 %v332_v1  ;;  %288 = vmatprep.subr.bf16.mxu1 %v332_v1  ;;  %v303_v2 = vld [vmem:[%s408_s1 + $0x10] sm:$0xff]   ;;  %v22_v4 = vld [vmem:[%s407_s0] sm:$0x1]  ;;  %v48_v10 = vunpack.c.l.s4 %v334_v9  ;;  %vm93_vm1 = vcmask 523264   ;;  %vm162_vm2 = vcmask 261120  }
   0x2   :  { %277 = vmatpush3.bf16.msra.mxu0 %v302_v0  ;;  %284 = vmatprep.mubr.msk.bf16.mxu0 %vm333_vm0, %v332_v1  ;;  %v23_v5 = vld [vmem:[%s407_s0 + $0x1] sm:$0x1]  ;;  %v24_v6 = vld [vmem:[%s407_s0 + $0x2] sm:$0x1]  ;;  %v25_v7 = vld [vmem:[%s407_s0 + $0x3] sm:$0x1] }
   0x3   :  { %278 = vmatprep.subr.bf16.mxu0 %v332_v1  ;;  %292 = vmatprep.mubr.msk.bf16.mxu1 %vm333_vm0, %v332_v1  ;;  %v304_v8 = vld [vmem:[%s408_s1 + $0x8] sm:$0xff]   ;;  %v51_v11 = vshrl.u32 %v50_v3, 7  ;;  %v45_v12 = vcombine.low %v22_v4, %v23_v5  ;;  %v46_v13 = vcombine.low %v24_v6, %v25_v7  ;;  %v49_v14 = vunpack.c.0.s8 %v48_v10  ;;  %v305_v15 = vld [vmem:[%s408_s1] sm:$0xff]  }
   0x4   :  { %v306_v21 = vld [vmem:[%s410_s3 + $0x8] sm:$0xff]   ;;  %v307_v22 = vld [vmem:[%s410_s3] sm:$0xff]  }
   0x5   :  { %v52_v16 = vsub.s32 %v49_v14, %v51_v11  ;;  %289 = vmatpush3.bf16.msra.mxu1 %v306_v21  ;;  %v256_v23 = vld [vmem:[%s409_s2] ss:$0 sm:$0xff] }
   0x6   :  { %279 = vmatpush3.bf16.msra.mxu0 %v303_v2  ;;  %290 = vmatprep.subr.bf16.mxu1 %v332_v1  ;;  %v262_v31 = vld [vmem:[%s411_s4] ss:$0 sm:$0xff] }
   0x7   :  { %280 = vmatprep.subr.bf16.mxu0 %v332_v1  ;;  %v53_v17 = vrot.slane %v45_v12, %v52_v16  ;;  %v60_v18 = vrot.slane %v46_v13, %v52_v16 }
   0x9   :  { %v61_v19 = vcombine.low %v53_v17, %v60_v18  ;;  %291 = vmatpush3.bf16.msra.mxu1 %v307_v22 }
   0xa   :  { %281 = vmatpush3.bf16.msra.mxu0 %v304_v8 }
   0xb   :  { %282 = vmatprep.subr.bf16.mxu0 %v332_v1  ;;  %v68_v20 = vrot.slane %v61_v19, %v52_v16 }
   0xe   :  { %283 = vmatpush3.bf16.msra.mxu0 %v305_v15 }
  0x11   :  { %285 = vmatmul.mubr.msk.bf16.vlgmr.msra.gmra.mxu0 %vm93_vm1, %v68_v20 }
  0xd1   :  { %v131_v24 = vpop.f32.mrf.mxu0 }
  0xd2   :  { %v132_v25 = vadd.f32 %v256_v23, %v131_v24 }
  0xd3   :  { %v286_v26 = vpop.f32.mrf.mxu0 }
  0xd4   :  { %308 = vtanh.f32 %v132_v25 }
  0xd5   :  { %v134_v27 = vpop.f32.mrf.mxu0 }
  0xd7   :  { %v287_v28 = vpop.f32.mrf.mxu0 }
  0xe1   :  { %v309_v29 = vpop.eup %308 }
  0xe2   :  { %v138_v30 = vpack.c.bf16 %v309_v29, %v309_v29 }
  0xe4   :  { %293 = vmatmul.mubr.msk.bf16.vlgmr.msra.gmra.mxu1 %vm162_vm2, %v138_v30 }
 0x1a4   :  { %v200_v32 = vpop.f32.mrf.mxu1 }
 0x1a5   :  { %v201_v33 = vadd.f32 %v262_v31, %v200_v32 }
 0x1a6   :  { %v294_v34 = vpop.f32.mrf.mxu1 }
 0x1a7   :  { %v206_v35 = vpack.c.bf16 %v201_v33, %v201_v33 }
 0x1a8   :  { %v203_v36 = vpop.f32.mrf.mxu1 }
 0x1a9   :  { %v214_v37 = vrot.slane %v206_v35, %v52_v16 }
 0x1aa   :  { %v295_v38 = vpop.f32.mrf.mxu1 }
 0x1ab   :  { %v215_v39 = vcombine.high %v214_v37, %v214_v37  ;;  %v222_v40 = vrot.slane %v214_v37, %v52_v16  ;;  %266 = vst.sshfl [vmem:[#allocation2] sm:$0x1 pattern:$0x73625140] %v214_v37 }
 0x1ad   :  { %v229_v41 = vrot.slane %v215_v39, %v52_v16  ;;  %v230_v42 = vcombine.high %v222_v40, %v222_v40  ;;  %267 = vst.sshfl [vmem:[#allocation2 + $0x1] sm:$0x1 pattern:$0x73625140] %v215_v39 }
 0x1af   :  { %v231_v43 = vcombine.high %v229_v41, %v229_v41  ;;  %238 = vst [vmem:[#allocation2 + $0x2] sm:$0x1] %v230_v42 }
 0x1b1   :  { %239 = vst [vmem:[#allocation2 + $0x3] sm:$0x1] %v231_v43 }
 0x1b2   :  { %244 = vsyncadd [#allocation3], 48  ;;  %s335_s2 = smov [#allocation2]  }
 0x1b3   :  { %s245_s3 = sshll.u32 %s335_s2, 4  ;;  %s246_s3 = int_to_ptr.vmem [resolvable:$true] %s245_s3 }
 0x1b4   :  { %s310_s4 = scalar_lea.vmem %s246_s3, 16  ;;  %s314_s15 = scalar_lea.vmem %s246_s3, 64 }
 0x1b5   :  { %p311_p0 = scmp.ne.s32.totalorder %s246_s3, %s310_s4  ;;  %p315_p1 = scmp.lt.s32.totalorder %s246_s3, %s246_s3 }
 0x1b6   :  { %p316_p2 = scmp.lt.s32.totalorder %s314_s15, %s310_s4 }
 0x1b8   :  { %p317_p3 = por %p316_p2, %p315_p1 }
 0x1ba   :  { %p318_p4 = pnand %p317_p3, %p311_p0 }
 0x1bc   :  { %321 = shalt.err (!%p318_p4)
}
 0x1bd   :  { %s336_s16 = smov 16   ;;  %s337_s17 = smov 1  }
 0x1be   :  { %251 = dma.vmem_to_hbm [thread:$0]  %s246_s3, 16, %s412_s5, [#allocation3], %s336_s16, %s336_s16, %s337_s17  }
 0x1bf   :  { %330 = dma.done.wait [#allocation3], 64  }
 0x1c0   :  { %331 = vsyncadd [#allocation3], 4294967232 }
 0x1c1   :  { %255 = vsyncpa [#allocation3], 1 }

</bundles_post_ra>
